<compile_context>
chip_gen: v6e
topology: v6e:2x2x1
jax: 0.10.0
libtpu: 0.0.40
codegen_flags: <defaults>
</compile_context>

<pallas_src>
import numpy as np
import jax
import jax.numpy as jnp
from jax import lax
from jax.experimental import pallas as pl
from jax.experimental.pallas import tpu as pltpu

LANES = 128  # TPU lane width; N (= W*OUT_CH) and each K segment pad to this.
KH = 3       # vertical taps of the synthetic engine's conv


# ----------------------------- Pallas kernel ------------------------------ #

def _conv_fused_kernel(x_ref, w_ref, b_ref, o_ref):
    """Fused 3x3 same-padding conv + f32 bias + ReLU for the whole batch.

    x_ref: [B*H, 3*128] bf16 - pre-shifted padded image rows; lane segment
           d (d*128 .. d*128+127) of output row (b, h) holds padded row h+d,
           packed as lane = w_pad * C + c and zero-padded to 128 lanes.
    w_ref: [3*128, 128] bf16 - stacked block-banded per-tap weight matrices;
           output column = o * W + w (o-major).
    b_ref: [1, 128] f32 - bias broadcast over W (lane = o*W + w -> bias[o]).
    o_ref: [B*H, 128] f32.
    """
    acc = jnp.dot(x_ref[...], w_ref[...], preferred_element_type=jnp.float32)
    o_ref[...] = jnp.maximum(acc + b_ref[...], 0.0)


def _conv3x3_relu_pallas(lhs, w2d, bias_row):
    """lhs: [M, 384] bf16, w2d: [384, 128] bf16, bias_row: [1, 128] f32
    -> [M, 128] f32 (lane = o*W + w)."""
    m, k = lhs.shape
    n = w2d.shape[-1]
    return pl.pallas_call(
        _conv_fused_kernel,
        out_shape=jax.ShapeDtypeStruct((m, n), jnp.float32),
        grid=(1,),  # single step: whole batch in one M=B*H dot
        in_specs=[
            pl.BlockSpec((m, k), lambda i: (0, 0)),
            pl.BlockSpec((k, n), lambda i: (0, 0)),
            pl.BlockSpec((1, n), lambda i: (0, 0)),
        ],
        out_specs=pl.BlockSpec((m, n), lambda i: (0, 0)),
        compiler_params=pltpu.CompilerParams(
            dimension_semantics=("arbitrary",),
        ),
    )(lhs, w2d, bias_row)


# ------------------------------ glue (JAX) --------------------------------- #

@jax.jit
def _trt_conv_forward(x_f32, w2d, bias_row):
    """Pack the padded image into the pre-shifted lane layout, run the kernel,
    unpack to NCHW.  All packing ops live in one jit so XLA can fuse them."""
    B, C, H, W = x_f32.shape
    out_ch = LANES // W                                    # W * OUT_CH == 128

    x_nhwc = jnp.transpose(x_f32, (0, 2, 3, 1))                    # [B,H,W,C]
    xp = jnp.pad(x_nhwc, ((0, 0), (1, 1), (1, 1), (0, 0)))         # [B,H+2,W+2,C]
    rows = xp.reshape(B, H + 2, (W + 2) * C)                       # [B,18,72]
    rows = jnp.pad(rows, ((0, 0), (0, 0), (0, LANES - (W + 2) * C)))  # [B,18,128]
    # Pre-shift the three vertical taps: output row h sees padded rows h, h+1, h+2.
    lhs = jnp.concatenate([rows[:, d:d + H] for d in range(KH)], axis=-1)  # [B,H,384]
    lhs = lhs.reshape(B * H, KH * LANES).astype(jnp.bfloat16)

    out_rows = _conv3x3_relu_pallas(lhs, w2d, bias_row)            # [B*H,128] f32
    out = out_rows.reshape(B, H, out_ch, W)                        # o-major lanes
    return jnp.transpose(out, (0, 2, 1, 3))                        # NCHW f32


class TRTWrapperPallas:
    """Mirrors TRTWrapper.forward: dict of named inputs -> dict of f32 outputs."""

    IN_CH, OUT_CH, KW = 4, 8, 3
    PROF_H, PROF_W = 16, 16   # synthetic engine's (fixed) optimization profile

    def __init__(self, output_names=None):
        # Deterministic "engine" parameters (synthetic, not a checkpoint).
        key = jax.random.PRNGKey(0)
        kw_, kb_ = jax.random.split(key)
        # OIHW, as a PyTorch Conv2d would store it.
        self.weight_oihw = (
            jax.random.normal(kw_, (self.OUT_CH, self.IN_CH, KH, self.KW),
                              dtype=jnp.float32) * 0.1)
        self.bias = jax.random.normal(kb_, (self.OUT_CH,), dtype=jnp.float32) * 0.1
        self._input_names = ["input"]
        self._output_names = list(output_names) if output_names else ["output"]
        self.w2d = self._build_stacked_banded_weights()          # [384,128] bf16
        # f32 bias row, o-major lanes: lane o*W + w carries bias[o].
        self.bias_row = jnp.repeat(self.bias, self.PROF_W)[None, :]  # [1,128] f32

    def _build_stacked_banded_weights(self):
        """[KH*128, 128] stacked block-banded matrices, o-major output columns."""
        C, O, W = self.IN_CH, self.OUT_CH, self.PROF_W
        assert W * O == LANES, "engine profile requires W * OUT_CH == 128"
        assert (W + 2) * C <= LANES, "packed input rows must fit 128 lanes"
        w_np = np.asarray(self.weight_oihw, dtype=np.float32)      # [O,C,KH,KW]
        big = np.zeros((KH, LANES, LANES), dtype=np.float32)
        for di in range(KH):
            for dj in range(self.KW):
                tap = w_np[:, :, di, dj].T                         # [C, O]
                for wx in range(W):
                    # rows: padded-x position (wx+dj); cols: o*W + wx (o-major)
                    big[di, (wx + dj) * C:(wx + dj + 1) * C, wx::W] = tap
        return jnp.asarray(big.reshape(KH * LANES, LANES), dtype=jnp.bfloat16)

    def __call__(self, inputs):
        assert self._input_names is not None
        assert self._output_names is not None

        x = inputs[self._input_names[0]]
        assert x.ndim == 4, "Input dim is different from engine profile."
        # Mirror the torch.long -> int coercion in the original wrapper.
        if x.dtype == jnp.int64:
            x = x.astype(jnp.int32)
        x = x.astype(jnp.float32)                      # engine runs in f32/bf16

        B, C, H, W = x.shape                           # NCHW in
        assert (C, H, W) == (self.IN_CH, self.PROF_H, self.PROF_W), (
            "Input shape should be between the engine profile bounds.")

        out_nchw = _trt_conv_forward(x, self.w2d, self.bias_row)   # float32 NCHW
        return {self._output_names[0]: out_nchw}


# ------------------------------ reference ---------------------------------- #

def _reference(wrapper, x_nchw):
    y = lax.conv_general_dilated(
        x_nchw.astype(jnp.float32), wrapper.weight_oihw,
        window_strides=(1, 1), padding="SAME",
        dimension_numbers=("NCHW", "OIHW", "NCHW"))
    y = y + wrapper.bias[None, :, None, None]
    return jnp.maximum(y, 0.0)


if __name__ == "__main__":
    key = jax.random.PRNGKey(0)
    x = jax.random.normal(key, (2, 4, 16, 16), dtype=jnp.float32)  # NCHW

    wrapper = TRTWrapperPallas()
    outputs = wrapper({"input": x})
    out = outputs["output"]
    jax.block_until_ready(out)

    ref = _reference(wrapper, x)
    # bf16 activations/weights, f32 accumulation + f32 bias -> tight-ish tolerance.
    np.testing.assert_allclose(np.asarray(out), np.asarray(ref),
                               rtol=2e-2, atol=2e-2)

    assert out.shape == (2, 8, 16, 16) and out.dtype == jnp.float32
    print("KERNEL_OK")
</pallas_src>

<mosaic_0001>
module attributes {stable_mosaic.version = 11 : i64} {
  func.func @_conv_fused_kernel(%arg0: i32, %arg1: memref<32x384xbf16, #tpu.memory_space<vmem>>, %arg2: memref<384x128xbf16, #tpu.memory_space<vmem>>, %arg3: memref<1x128xf32, #tpu.memory_space<vmem>>, %arg4: memref<32x128xf32, #tpu.memory_space<vmem>>) attributes {dimension_semantics = [#tpu.dimension_semantics<arbitrary>], iteration_bounds = array<i64: 1>, scalar_prefetch = 0 : i64, scratch_operands = 0 : i64, tpu.core_type = #tpu.core_type<tc>, window_params = [{pipeline_mode = #tpu.pipeline_mode<synchronous>, transform_indices = @transform_0, window_bounds = array<i64: 32, 384>}, {pipeline_mode = #tpu.pipeline_mode<synchronous>, transform_indices = @transform_1, window_bounds = array<i64: 384, 128>}, {pipeline_mode = #tpu.pipeline_mode<synchronous>, transform_indices = @transform_2, window_bounds = array<i64: 1, 128>}, {pipeline_mode = #tpu.pipeline_mode<synchronous>, transform_indices = @transform_3, window_bounds = array<i64: 32, 128>}]} {
    %c0 = arith.constant 0 : index
    %c0_0 = arith.constant 0 : index
    %0 = vector.load %arg1[%c0, %c0_0] : memref<32x384xbf16, #tpu.memory_space<vmem>>, vector<32x384xbf16>
    %c0_1 = arith.constant 0 : index
    %c0_2 = arith.constant 0 : index
    %1 = vector.load %arg2[%c0_1, %c0_2] : memref<384x128xbf16, #tpu.memory_space<vmem>>, vector<384x128xbf16>
    %cst = arith.constant dense<0.000000e+00> : vector<32x128xf32>
    %2 = tpu.matmul %0, %1, %cst {dimension_numbers = #tpu.dot_dimension_numbers<[1], [0], [0], [1], [0, 0, 1, 1], [], []>} : vector<32x384xbf16>, vector<384x128xbf16>, vector<32x128xf32> -> vector<32x128xf32>
    %c0_3 = arith.constant 0 : index
    %c0_4 = arith.constant 0 : index
    %3 = vector.load %arg3[%c0_3, %c0_4] : memref<1x128xf32, #tpu.memory_space<vmem>>, vector<1x128xf32>
    %4 = vector.broadcast %3 : vector<1x128xf32> to vector<32x128xf32>
    %5 = arith.addf %2, %4 : vector<32x128xf32>
    %cst_5 = arith.constant 0.000000e+00 : f32
    %6 = vector.broadcast %cst_5 : f32 to vector<32x128xf32>
    %7 = arith.maximumf %5, %6 : vector<32x128xf32>
    %c0_6 = arith.constant 0 : index
    %c0_7 = arith.constant 0 : index
    %8 = vector.load %arg4[%c0_6, %c0_7] : memref<32x128xf32, #tpu.memory_space<vmem>>, vector<32x128xf32>
    tpu.vector_store %arg4[%c0_6, %c0_7], %7 {strides = array<i32>} : memref<32x128xf32, #tpu.memory_space<vmem>>, vector<32x128xf32>,
    return
  }
  func.func @transform_0(%arg0: i32) -> (i32, i32) {
    %c0_i32 = arith.constant 0 : i32
    %c0_i32_0 = arith.constant 0 : i32
    %c0_i32_1 = arith.constant 0 : i32
    return %c0_i32, %c0_i32_0 : i32, i32
  }
  func.func @transform_1(%arg0: i32) -> (i32, i32) {
    %c0_i32 = arith.constant 0 : i32
    %c0_i32_0 = arith.constant 0 : i32
    %c0_i32_1 = arith.constant 0 : i32
    return %c0_i32, %c0_i32_0 : i32, i32
  }
  func.func @transform_2(%arg0: i32) -> (i32, i32) {
    %c0_i32 = arith.constant 0 : i32
    %c0_i32_0 = arith.constant 0 : i32
    %c0_i32_1 = arith.constant 0 : i32
    return %c0_i32, %c0_i32_0 : i32, i32
  }
  func.func @transform_3(%arg0: i32) -> (i32, i32) {
    %c0_i32 = arith.constant 0 : i32
    %c0_i32_0 = arith.constant 0 : i32
    %c0_i32_1 = arith.constant 0 : i32
    return %c0_i32, %c0_i32_0 : i32, i32
  }
}

</mosaic_0001>

<bundles_post_ra>
// kernel: _trt_conv_forward.1
= control target key start
LH: loop header
LB: loop body
LE: loop exit
PB: predicated region body
PF: predicated region fallthrough
CT: control target
= control target key end

     0   :  { %s610_s1 = inlined_call_operand.vmem [shape: bf16[384,128], index: 1, kind: input, shape index: {}]   ;;  %s611_s0 = inlined_call_operand.vmem [shape: bf16[32,384], index: 0, kind: input, shape index: {}]   ;;  %s612_s2 = inlined_call_operand.vmem [shape: f32[1,128], index: 2, kind: input, shape index: {}]   ;;  %s613_s3 = inlined_call_operand.vmem [shape: f32[32,128], index: 3, kind: output, shape index: {}]  }
   0x1   :  { %v453_v0 = vld [vmem:[%s610_s1 + $0x78] sm:$0xff]   ;;  %v455_v2 = vld [vmem:[%s610_s1 + $0x70] sm:$0xff]   ;;  %v458_v5 = vld [vmem:[%s610_s1 + $0x68] sm:$0xff]  }
   0x2   :  { %v454_v1 = vld [vmem:[%s610_s1 + $0x38] sm:$0xff]   ;;  %395 = vmatprep.subr.bf16.mxu0 %v453_v0  ;;  %v457_v4 = vld [vmem:[%s610_s1 + $0x30] sm:$0xff]   ;;  %v460_v7 = vld [vmem:[%s610_s1 + $0x28] sm:$0xff]  }
   0x3   :  { %396 = vmatpush3.bf16.msra.mxu0 %v454_v1  ;;  %v456_v3 = vld [vmem:[%s610_s1 + $0xb8] sm:$0xff]   ;;  %v459_v6 = vld [vmem:[%s610_s1 + $0xb0] sm:$0xff]   ;;  %v461_v8 = vld [vmem:[%s610_s1 + $0x60] sm:$0xff]  }
   0x4   :  { %397 = vmatprep.subr.bf16.mxu0 %v455_v2  ;;  %433 = vmatprep.subr.bf16.mxu1 %v456_v3  ;;  %v462_v9 = vld [vmem:[%s610_s1 + $0xa8] sm:$0xff]   ;;  %v463_v10 = vld [vmem:[%s610_s1 + $0x20] sm:$0xff]   ;;  %v464_v11 = vld [vmem:[%s610_s1 + $0x58] sm:$0xff]  }
   0x5   :  { %434 = vmatpush3.bf16.msra.mxu1 %v456_v3  ;;  %v465_v12 = vld [vmem:[%s610_s1 + $0xa0] sm:$0xff]   ;;  %v466_v13 = vld [vmem:[%s610_s1 + $0x18] sm:$0xff]   ;;  %v467_v15 = vld [vmem:[%s610_s1 + $0x50] sm:$0xff]  }
   0x6   :  { %435 = vmatprep.subr.bf16.mxu1 %v459_v6  ;;  %v468_v14 = vld [vmem:[%s610_s1 + $0x98] sm:$0xff]   ;;  %v469_v16 = vld [vmem:[%s610_s1 + $0x10] sm:$0xff]   ;;  %v470_v18 = vld [vmem:[%s610_s1 + $0x48] sm:$0xff]  }
   0x7   :  { %398 = vmatpush3.bf16.msra.mxu0 %v457_v4  ;;  %v471_v17 = vld [vmem:[%s610_s1 + $0x90] sm:$0xff]   ;;  %v472_v19 = vld [vmem:[%s610_s1 + $0x8] sm:$0xff]   ;;  %v473_v20 = vld [vmem:[%s610_s1 + $0x40] sm:$0xff]  }
   0x8   :  { %399 = vmatprep.subr.bf16.mxu0 %v458_v5  ;;  %v474_v21 = vld [vmem:[%s610_s1 + $0x88] sm:$0xff]   ;;  %v478_v22 = vld [vmem:[%s611_s0 + $0x4] ss:$12 sps:$4 sm:$0xff]   ;;  %v364_v32 = vld [vmem:[%s612_s2] ss:$0 sm:$0xff] }
   0x9   :  { %436 = vmatpush3.bf16.msra.mxu1 %v459_v6  ;;  %v475_v23 = vld [vmem:[%s610_s1] sm:$0xff]   ;;  %286 = vmatprep.mubr.bf16.mxu0 %v478_v22  ;;  %v480_v24 = vld [vmem:[%s611_s0 + $0x8] ss:$12 sps:$4 sm:$0xff]  }
   0xa   :  { %437 = vmatprep.subr.bf16.mxu1 %v462_v9  ;;  %v479_v25 = vld [vmem:[%s610_s1 + $0x80] sm:$0xff]   ;;  %449 = vmatprep.mubr.bf16.mxu1 %v480_v24  ;;  %v482_v27 = vld [vmem:[%s611_s0 + $0x1c] ss:$12 sps:$4 sm:$0xff]  }
   0xb   :  { %400 = vmatpush3.bf16.msra.mxu0 %v460_v7  ;;  %v476_v26 = vld [vmem:[%s611_s0] ss:$12 sps:$4 sm:$0xff]   ;;  %v484_v29 = vld [vmem:[%s611_s0 + $0x18] ss:$12 sps:$4 sm:$0xff]  }
   0xc   :  { %401 = vmatprep.subr.bf16.mxu0 %v461_v8  ;;  %v481_v28 = vld [vmem:[%s611_s0 + $0x20] ss:$12 sps:$4 sm:$0xff]  }
   0xd   :  { %438 = vmatpush3.bf16.msra.mxu1 %v462_v9 }
   0xe   :  { %439 = vmatprep.subr.bf16.mxu1 %v465_v12 }
   0xf   :  { %402 = vmatpush3.bf16.msra.mxu0 %v463_v10 }
  0x10   :  { %403 = vmatprep.subr.bf16.mxu0 %v464_v11 }
  0x11   :  { %440 = vmatpush3.bf16.msra.mxu1 %v465_v12 }
  0x12   :  { %441 = vmatprep.subr.bf16.mxu1 %v468_v14 }
  0x13   :  { %404 = vmatpush3.bf16.msra.mxu0 %v466_v13 }
  0x14   :  { %405 = vmatprep.subr.bf16.mxu0 %v467_v15 }
  0x15   :  { %442 = vmatpush3.bf16.msra.mxu1 %v468_v14 }
  0x16   :  { %443 = vmatprep.subr.bf16.mxu1 %v471_v17 }
  0x17   :  { %406 = vmatpush3.bf16.msra.mxu0 %v469_v16 }
  0x18   :  { %407 = vmatprep.subr.bf16.mxu0 %v470_v18 }
  0x19   :  { %444 = vmatpush3.bf16.msra.mxu1 %v471_v17 }
  0x1a   :  { %445 = vmatprep.subr.bf16.mxu1 %v474_v21 }
  0x1b   :  { %408 = vmatpush3.bf16.msra.mxu0 %v472_v19 }
  0x1c   :  { %409 = vmatprep.subr.bf16.mxu0 %v473_v20 }
  0x1d   :  { %446 = vmatpush3.bf16.msra.mxu1 %v474_v21 }
  0x1e   :  { %447 = vmatprep.subr.bf16.mxu1 %v479_v25 }
  0x1f   :  { %410 = vmatpush3.bf16.msra.mxu0 %v475_v23 }
  0x21   :  { %448 = vmatpush3.bf16.msra.mxu1 %v479_v25 }
  0x22   :  { %287 = vmatmul.mubr.bf16.vlgmr.msra.gmra.mxu0 %v476_v26 }
  0x23   :  { %294 = vmatprep.mubr.bf16.mxu0 %v482_v27 }
  0x24   :  { %450 = vmatmul.mubr.bf16.vlgmr.msra.gmra.mxu1 %v481_v28 }
  0x2a   :  { %295 = vmatmul.mubr.bf16.gmra.mxu0 %v484_v29 }
  0xe2   :  { %v411_v30 = vpop.f32.mrf.mxu0 }
  0xe4   :  { %v412_v31 = vpop.f32.mrf.mxu0  ;;  %v451_v34 = vpop.f32.mrf.mxu1 }
  0xe5   :  { %v413_v33 = vadd.f32 %v412_v31, %v411_v30 }
  0xe6   :  { %v414_v35 = vpop.f32.mrf.mxu0  ;;  %v337_v37 = vpop.f32.mrf.mxu1 }
  0xe7   :  { %v289_v36 = vadd.f32 %v413_v33, %v364_v32 }
  0xe8   :  { %v415_v38 = vpop.f32.mrf.mxu0  ;;  %v452_v41 = vpop.f32.mrf.mxu1 }
  0xe9   :  { %v416_v39 = vadd.f32 %v415_v38, %v414_v35  ;;  %v338_v40 = vadd.f32 %v337_v37, %v289_v36 }
  0xea   :  { %v417_v42 = vpop.f32.mrf.mxu0  ;;  %v340_v45 = vpop.f32.mrf.mxu1 }
  0xeb   :  { %v352_v43 = vmax.f32 %v338_v40, 0.0  ;;  %v292_v44 = vadd.f32 %v416_v39, %v364_v32 }
  0xec   :  { %v418_v46 = vpop.f32.mrf.mxu0 }
  0xed   :  { %356 = vst [vmem:[%s613_s3] sm:$0xff] %v352_v43  ;;  %v419_v47 = vadd.f32 %v418_v46, %v417_v42  ;;  %v341_v48 = vadd.f32 %v340_v45, %v292_v44 }
  0xee   :  { %v420_v49 = vpop.f32.mrf.mxu0 }
  0xef   :  { %v297_v50 = vadd.f32 %v419_v47, %v364_v32  ;;  %v353_v51 = vmax.f32 %v341_v48, 0.0 }
  0xf0   :  { %v421_v52 = vpop.f32.mrf.mxu0 }
  0xf1   :  { %v346_v53 = vadd.f32 %v451_v34, %v297_v50  ;;  %357 = vst [vmem:[%s613_s3 + $0x8] sm:$0xff] %v353_v51  ;;  %v422_v54 = vadd.f32 %v421_v52, %v420_v49 }
  0xf3   :  { %v354_v55 = vmax.f32 %v346_v53, 0.0  ;;  %v300_v56 = vadd.f32 %v422_v54, %v364_v32 }
  0xf5   :  { %358 = vst [vmem:[%s613_s3 + $0x10] sm:$0xff] %v354_v55  ;;  %v349_v57 = vadd.f32 %v452_v41, %v300_v56 }
  0xf7   :  { %v355_v58 = vmax.f32 %v349_v57, 0.0 }
  0xf9   :  { %359 = vst [vmem:[%s613_s3 + $0x18] sm:$0xff] %v355_v58 }

</bundles_post_ra>
